<compile_context>
chip_gen: v7x
topology: tpu7x:2x2x1
jax: 0.10.0
libtpu: 0.0.40
codegen_flags: <defaults>
</compile_context>

<pallas_src>
import jax
import jax.numpy as jnp
from jax.experimental import pallas as pl
from jax.experimental.pallas import tpu as pltpu


def _round_up(n, m):
    return ((n + m - 1) // m) * m


def _cdiv(a, b):
    return -(-a // b)


# ---------------------------------------------------------------------------
# Kernel factory: fused actor+critic MLP, 3 matmuls per row-chunk.
# ---------------------------------------------------------------------------
def _make_policy_ac_kernel(tb, n_chunks):
    chunk = tb // n_chunks

    def kernel(x_ref, w1_ref, b1_ref, w2_ref, b2_ref, w3_ref, b3_ref, out_ref):
        w1 = w1_ref[...]
        b1 = b1_ref[...]
        w2 = w2_ref[...]
        b2 = b2_ref[...]
        w3 = w3_ref[...]
        b3 = b3_ref[...]
        cdt = w1.dtype  # bf16 compute dtype for MXU operands

        # Static unroll over row chunks: lets MXU (dot), EUP (tanh) and VALU
        # (bias add) work of neighbouring chunks overlap in the VLIW schedule.
        for c in range(n_chunks):
            rows = pl.ds(c * chunk, chunk)
            x = x_ref[rows, :]
            # layer 1: [chunk, S] @ [S, 2H]  (actor | critic concatenated)
            h = jnp.tanh(
                jnp.dot(x, w1, preferred_element_type=jnp.float32) + b1
            )
            # layer 2: block-diagonal [2H, 2H] keeps branches independent
            h = jnp.tanh(
                jnp.dot(h.astype(cdt), w2, preferred_element_type=jnp.float32) + b2
            )
            # layer 3: block-diagonal [2H, P] -> cols [0:A)=mean, col A=value
            y = jnp.dot(h.astype(cdt), w3, preferred_element_type=jnp.float32) + b3
            out_ref[rows, :] = y.astype(out_ref.dtype)

    return kernel


# ---------------------------------------------------------------------------
# Parameter packing (done once, outside the kernel / per parameter update).
# ---------------------------------------------------------------------------
def pack_params(p, *, compute_dtype=jnp.bfloat16):
    """Pack per-layer params (weights stored [in, out]) into the fused
    concatenated / block-diagonal layout consumed by the kernel."""
    S, H = p["w1a"].shape
    A = p["w3a"].shape[1]
    out_pad = _round_up(A + 1, 8)  # lane-padded output width (mean cols + value col)

    w1 = jnp.concatenate([p["w1a"], p["w1c"]], axis=1).astype(compute_dtype)  # [S, 2H]
    b1 = jnp.concatenate([p["b1a"], p["b1c"]], axis=1).astype(jnp.float32)    # [1, 2H]

    w2 = jnp.zeros((2 * H, 2 * H), jnp.float32)
    w2 = w2.at[:H, :H].set(p["w2a"]).at[H:, H:].set(p["w2c"])
    w2 = w2.astype(compute_dtype)                                             # [2H, 2H]
    b2 = jnp.concatenate([p["b2a"], p["b2c"]], axis=1).astype(jnp.float32)    # [1, 2H]

    w3 = jnp.zeros((2 * H, out_pad), jnp.float32)
    w3 = w3.at[:H, :A].set(p["w3a"]).at[H:, A:A + 1].set(p["w3c"])
    w3 = w3.astype(compute_dtype)                                             # [2H, P]
    b3 = jnp.zeros((1, out_pad), jnp.float32)
    b3 = b3.at[:, :A].set(p["b3a"]).at[:, A:A + 1].set(p["b3c"])              # [1, P]

    return {"w1": w1, "b1": b1, "w2": w2, "b2": b2, "w3": w3, "b3": b3,
            "sigma": p["sigma"]}


# ---------------------------------------------------------------------------
# Batch tiling policy.
# ---------------------------------------------------------------------------
def _choose_tiling(B, batch_tile):
    n_steps = _cdiv(B, batch_tile)
    # v7x has two TensorCores; give the "parallel" batch axis >= 2 steps to
    # shard whenever the batch is big enough to split usefully.  No-op on
    # single-TC v5e/v6e.
    if B > 64 and n_steps < 2:
        n_steps = 2
    tb = _round_up(_cdiv(B, n_steps), 16)   # 16-row alignment for bf16 sublanes
    B_pad = tb * n_steps
    return tb, B_pad, n_steps


# ---------------------------------------------------------------------------
# Wrapper
# ---------------------------------------------------------------------------
def policy_ac_forward(x, packed, *, batch_tile=1024):
    """x: [B, state_space] f32. packed: dict from pack_params.

    Returns (action_mean [B, A], sigma [1, A], state_value [B, 1]).
    The Normal distribution is represented by (action_mean, sigma)."""
    B, S = x.shape
    A = packed["sigma"].shape[1]
    twoH = packed["w1"].shape[1]
    out_pad = packed["w3"].shape[1]
    compute_dtype = packed["w1"].dtype

    x = x.astype(compute_dtype)

    tb, B_pad, n_steps = _choose_tiling(B, batch_tile)
    if B_pad != B:
        x = jnp.pad(x, ((0, B_pad - B), (0, 0)))

    # 2-4 row chunks inside each tile for MXU/EUP overlap (chunk stays a
    # multiple of 16 rows).
    if tb % 64 == 0:
        n_chunks = 4
    elif tb % 32 == 0:
        n_chunks = 2
    else:
        n_chunks = 1

    kernel = _make_policy_ac_kernel(tb, n_chunks)

    in_specs = [
        pl.BlockSpec((tb, S), lambda i: (i, 0)),           # x: tiled over batch
        pl.BlockSpec((S, twoH), lambda i: (0, 0)),         # w1 (VMEM-resident)
        pl.BlockSpec((1, twoH), lambda i: (0, 0)),         # b1
        pl.BlockSpec((twoH, twoH), lambda i: (0, 0)),      # w2
        pl.BlockSpec((1, twoH), lambda i: (0, 0)),         # b2
        pl.BlockSpec((twoH, out_pad), lambda i: (0, 0)),   # w3
        pl.BlockSpec((1, out_pad), lambda i: (0, 0)),      # b3
    ]
    out_spec = pl.BlockSpec((tb, out_pad), lambda i: (i, 0))

    out = pl.pallas_call(
        kernel,
        out_shape=jax.ShapeDtypeStruct((B_pad, out_pad), jnp.float32),
        grid=(n_steps,),
        in_specs=in_specs,
        out_specs=out_spec,
        compiler_params=pltpu.CompilerParams(
            dimension_semantics=("parallel",),
        ),
    )(x, packed["w1"], packed["b1"], packed["w2"], packed["b2"],
      packed["w3"], packed["b3"])

    action_mean = out[:B, :A]
    state_value = out[:B, A:A + 1]
    # sigma is batch-independent -> plain JAX, outside the kernel.
    sigma = jax.nn.softplus(packed["sigma"].astype(jnp.float32))
    # TODO(synk): torch.distributions.Normal has no kernel equivalent; it is
    # represented by its parameters (action_mean, sigma).
    return action_mean, sigma, state_value


# ---------------------------------------------------------------------------
# Init (matches Policy_ac.init_weights: W ~ N(0, 0.1), b = 0, sigma = 0.75)
# Weights stored as [in, out] (transposed vs torch Linear).
# ---------------------------------------------------------------------------
def init_params(key, state_space, action_space, hidden=64, init_sigma=0.75):
    keys = jax.random.split(key, 6)

    def w(k, fan_in, fan_out):
        return (0.1 * jax.random.normal(k, (fan_in, fan_out))).astype(jnp.float32)

    def b(n):
        return jnp.zeros((1, n), jnp.float32)

    return {
        "w1a": w(keys[0], state_space, hidden), "b1a": b(hidden),
        "w2a": w(keys[1], hidden, hidden),      "b2a": b(hidden),
        "w3a": w(keys[2], hidden, action_space), "b3a": b(action_space),
        "sigma": jnp.full((1, action_space), init_sigma, jnp.float32),
        "w1c": w(keys[3], state_space, hidden), "b1c": b(hidden),
        "w2c": w(keys[4], hidden, hidden),      "b2c": b(hidden),
        "w3c": w(keys[5], hidden, 1),           "b3c": b(1),
    }


def _reference_forward(x, p):
    """Pure-JAX f32 reference of the unfused forward pass (sanity check)."""
    h = jnp.tanh(x @ p["w1a"] + p["b1a"])
    h = jnp.tanh(h @ p["w2a"] + p["b2a"])
    mean = h @ p["w3a"] + p["b3a"]
    sigma = jax.nn.softplus(p["sigma"])
    c = jnp.tanh(x @ p["w1c"] + p["b1c"])
    c = jnp.tanh(c @ p["w2c"] + p["b2c"])
    value = c @ p["w3c"] + p["b3c"]
    return mean, sigma, value


if __name__ == "__main__":
    state_space = 16
    action_space = 4
    batch = 8

    key = jax.random.PRNGKey(0)
    k_params, k_x = jax.random.split(key)

    params = init_params(k_params, state_space, action_space)
    packed = pack_params(params)
    x = jax.random.normal(k_x, (batch, state_space), dtype=jnp.float32)

    action_mean, sigma, state_value = jax.block_until_ready(
        policy_ac_forward(x, packed)
    )

    ref_mean, ref_sigma, ref_value = _reference_forward(x, params)
    assert action_mean.shape == (batch, action_space)
    assert sigma.shape == (1, action_space)
    assert state_value.shape == (batch, 1)
    # bf16 MXU operands (f32 accumulation) -> loosened tolerances vs f32 ref.
    assert jnp.allclose(action_mean, ref_mean, atol=2e-2, rtol=2e-2)
    assert jnp.allclose(sigma, ref_sigma, atol=1e-5, rtol=1e-5)
    assert jnp.allclose(state_value, ref_value, atol=2e-2, rtol=2e-2)

    # The Normal(action_mean, sigma) distribution is represented by its
    # parameters; sampling/log_prob can be done in plain JAX downstream.
    print("KERNEL_OK")
</pallas_src>

<mosaic_0001>
module attributes {stable_mosaic.version = 11 : i64} {
  func.func @kernel(%arg0: i32, %arg1: memref<16x16xbf16, #tpu.memory_space<vmem>>, %arg2: memref<16x128xbf16, #tpu.memory_space<vmem>>, %arg3: memref<1x128xf32, #tpu.memory_space<vmem>>, %arg4: memref<128x128xbf16, #tpu.memory_space<vmem>>, %arg5: memref<1x128xf32, #tpu.memory_space<vmem>>, %arg6: memref<128x8xbf16, #tpu.memory_space<vmem>>, %arg7: memref<1x8xf32, #tpu.memory_space<vmem>>, %arg8: memref<16x8xf32, #tpu.memory_space<vmem>>) attributes {dimension_semantics = [#tpu.dimension_semantics<parallel>], iteration_bounds = array<i64: 1>, scalar_prefetch = 0 : i64, scratch_operands = 0 : i64, tpu.core_type = #tpu.core_type<tc>, window_params = [{transform_indices = @transform_0, window_bounds = array<i64: 16, 16>}, {pipeline_mode = #tpu.pipeline_mode<synchronous>, transform_indices = @transform_1, window_bounds = array<i64: 16, 128>}, {pipeline_mode = #tpu.pipeline_mode<synchronous>, transform_indices = @transform_2, window_bounds = array<i64: 1, 128>}, {pipeline_mode = #tpu.pipeline_mode<synchronous>, transform_indices = @transform_3, window_bounds = array<i64: 128, 128>}, {pipeline_mode = #tpu.pipeline_mode<synchronous>, transform_indices = @transform_4, window_bounds = array<i64: 1, 128>}, {pipeline_mode = #tpu.pipeline_mode<synchronous>, transform_indices = @transform_5, window_bounds = array<i64: 128, 8>}, {pipeline_mode = #tpu.pipeline_mode<synchronous>, transform_indices = @transform_6, window_bounds = array<i64: 1, 8>}, {transform_indices = @transform_7, window_bounds = array<i64: 16, 8>}]} {
    %c0 = arith.constant 0 : index
    %c0_0 = arith.constant 0 : index
    %0 = vector.load %arg2[%c0, %c0_0] : memref<16x128xbf16, #tpu.memory_space<vmem>>, vector<16x128xbf16>
    %c0_1 = arith.constant 0 : index
    %c0_2 = arith.constant 0 : index
    %1 = vector.load %arg3[%c0_1, %c0_2] : memref<1x128xf32, #tpu.memory_space<vmem>>, vector<1x128xf32>
    %c0_3 = arith.constant 0 : index
    %c0_4 = arith.constant 0 : index
    %2 = vector.load %arg4[%c0_3, %c0_4] : memref<128x128xbf16, #tpu.memory_space<vmem>>, vector<128x128xbf16>
    %c0_5 = arith.constant 0 : index
    %c0_6 = arith.constant 0 : index
    %3 = vector.load %arg5[%c0_5, %c0_6] : memref<1x128xf32, #tpu.memory_space<vmem>>, vector<1x128xf32>
    %c0_7 = arith.constant 0 : index
    %c0_8 = arith.constant 0 : index
    %4 = vector.load %arg6[%c0_7, %c0_8] : memref<128x8xbf16, #tpu.memory_space<vmem>>, vector<128x8xbf16>
    %c0_9 = arith.constant 0 : index
    %c0_10 = arith.constant 0 : index
    %5 = vector.load %arg7[%c0_9, %c0_10] : memref<1x8xf32, #tpu.memory_space<vmem>>, vector<1x8xf32>
    %c0_11 = arith.constant 0 : index
    %c0_12 = arith.constant 0 : index
    %6 = vector.load %arg1[%c0_11, %c0_12] : memref<16x16xbf16, #tpu.memory_space<vmem>>, vector<16x16xbf16>
    %cst = arith.constant dense<0.000000e+00> : vector<16x128xf32>
    %7 = tpu.matmul %6, %0, %cst {dimension_numbers = #tpu.dot_dimension_numbers<[1], [0], [0], [1], [0, 0, 1, 1], [], []>} : vector<16x16xbf16>, vector<16x128xbf16>, vector<16x128xf32> -> vector<16x128xf32>
    %8 = vector.broadcast %1 : vector<1x128xf32> to vector<16x128xf32>
    %9 = arith.addf %7, %8 : vector<16x128xf32>
    %10 = math.tanh %9 : vector<16x128xf32>
    %11 = arith.truncf %10 : vector<16x128xf32> to vector<16x128xbf16>
    %cst_13 = arith.constant dense<0.000000e+00> : vector<16x128xf32>
    %12 = tpu.matmul %11, %2, %cst_13 {dimension_numbers = #tpu.dot_dimension_numbers<[1], [0], [0], [1], [0, 0, 1, 1], [], []>} : vector<16x128xbf16>, vector<128x128xbf16>, vector<16x128xf32> -> vector<16x128xf32>
    %13 = vector.broadcast %3 : vector<1x128xf32> to vector<16x128xf32>
    %14 = arith.addf %12, %13 : vector<16x128xf32>
    %15 = math.tanh %14 : vector<16x128xf32>
    %16 = arith.truncf %15 : vector<16x128xf32> to vector<16x128xbf16>
    %cst_14 = arith.constant dense<0.000000e+00> : vector<16x8xf32>
    %17 = tpu.matmul %16, %4, %cst_14 {dimension_numbers = #tpu.dot_dimension_numbers<[1], [0], [0], [1], [0, 0, 1, 1], [], []>} : vector<16x128xbf16>, vector<128x8xbf16>, vector<16x8xf32> -> vector<16x8xf32>
    %18 = vector.broadcast %5 : vector<1x8xf32> to vector<16x8xf32>
    %19 = arith.addf %17, %18 : vector<16x8xf32>
    %c0_15 = arith.constant 0 : index
    %c0_16 = arith.constant 0 : index
    %20 = vector.load %arg8[%c0_15, %c0_16] : memref<16x8xf32, #tpu.memory_space<vmem>>, vector<16x8xf32>
    tpu.vector_store %arg8[%c0_15, %c0_16], %19 {strides = array<i32>} : memref<16x8xf32, #tpu.memory_space<vmem>>, vector<16x8xf32>,
    return
  }
  func.func @transform_0(%arg0: i32) -> (i32, i32) {
    %c0_i32 = arith.constant 0 : i32
    %c0_i32_0 = arith.constant 0 : i32
    return %arg0, %c0_i32 : i32, i32
  }
  func.func @transform_1(%arg0: i32) -> (i32, i32) {
    %c0_i32 = arith.constant 0 : i32
    %c0_i32_0 = arith.constant 0 : i32
    %c0_i32_1 = arith.constant 0 : i32
    return %c0_i32, %c0_i32_0 : i32, i32
  }
  func.func @transform_2(%arg0: i32) -> (i32, i32) {
    %c0_i32 = arith.constant 0 : i32
    %c0_i32_0 = arith.constant 0 : i32
    %c0_i32_1 = arith.constant 0 : i32
    return %c0_i32, %c0_i32_0 : i32, i32
  }
  func.func @transform_3(%arg0: i32) -> (i32, i32) {
    %c0_i32 = arith.constant 0 : i32
    %c0_i32_0 = arith.constant 0 : i32
    %c0_i32_1 = arith.constant 0 : i32
    return %c0_i32, %c0_i32_0 : i32, i32
  }
  func.func @transform_4(%arg0: i32) -> (i32, i32) {
    %c0_i32 = arith.constant 0 : i32
    %c0_i32_0 = arith.constant 0 : i32
    %c0_i32_1 = arith.constant 0 : i32
    return %c0_i32, %c0_i32_0 : i32, i32
  }
  func.func @transform_5(%arg0: i32) -> (i32, i32) {
    %c0_i32 = arith.constant 0 : i32
    %c0_i32_0 = arith.constant 0 : i32
    %c0_i32_1 = arith.constant 0 : i32
    return %c0_i32, %c0_i32_0 : i32, i32
  }
  func.func @transform_6(%arg0: i32) -> (i32, i32) {
    %c0_i32 = arith.constant 0 : i32
    %c0_i32_0 = arith.constant 0 : i32
    %c0_i32_1 = arith.constant 0 : i32
    return %c0_i32, %c0_i32_0 : i32, i32
  }
  func.func @transform_7(%arg0: i32) -> (i32, i32) {
    %c0_i32 = arith.constant 0 : i32
    %c0_i32_0 = arith.constant 0 : i32
    return %arg0, %c0_i32 : i32, i32
  }
}

</mosaic_0001>

<bundles_post_ra>
// kernel: tpu_custom_call.1
= control target key start
LH: loop header
LB: loop body
LE: loop exit
PB: predicated region body
PF: predicated region fallthrough
CT: control target
= control target key end

     0   :  { %12 = vsyncpa [#allocation3], 0  ;;  %s489_s24 = smov [#allocation2]   ;;  %s632_s0 = inlined_call_operand.vmem [shape: bf16[16,16], index: 0, kind: input, shape index: {}]   ;;  %s633_s1 = inlined_call_operand.hbm [shape: bf16[16,128], index: 1, kind: input, shape index: {}]   ;;  %s634_s2 = inlined_call_operand.vmem [shape: f32[1,128], index: 2, kind: input, shape index: {}]   ;;  %s635_s3 = inlined_call_operand.vmem [shape: bf16[128,128], index: 3, kind: input, shape index: {}]   ;;  %s636_s4 = inlined_call_operand.vmem [shape: f32[1,128], index: 4, kind: input, shape index: {}]   ;;  %s637_s5 = inlined_call_operand.vmem [shape: bf16[128,8], index: 5, kind: input, shape index: {}]   ;;  %s638_s6 = inlined_call_operand.vmem [shape: f32[1,8], index: 6, kind: input, shape index: {}]   ;;  %s639_s7 = inlined_call_operand.vmem [shape: f32[16,8], index: 7, kind: output, shape index: {}]  }
   0x1   :  { %s20_s25 = sshll.u32 %s489_s24, 4  ;;  %s465_s28 = scalar_lea.hbm %s633_s1, 128  ;;  %s21_s25 = int_to_ptr.vmem [resolvable:$true] %s20_s25 }
   0x2   :  { %p466_p0 = scmp.ne.s32.totalorder %s633_s1, %s465_s28  ;;  %p469_p1 = scmp.lt.u32.totalorder %s465_s28, %s633_s1 }
   0x4   :  { %p471_p2 = pnand %p469_p1, %p466_p0 }
   0x6   :  { %474 = shalt.err (!%p471_p2)
}
   0x7   :  { %s475_s10 = scalar_lea.vmem %s21_s25, 128  ;;  %p480_p4 = scmp.lt.s32.totalorder %s21_s25, %s21_s25 }
   0x8   :  { %p476_p3 = scmp.ne.s32.totalorder %s21_s25, %s475_s10  ;;  %p481_p5 = scmp.lt.s32.totalorder %s475_s10, %s475_s10 }
   0xa   :  { %p482_p6 = por %p481_p5, %p480_p4 }
   0xc   :  { %p483_p7 = pnand %p482_p6, %p476_p3 }
   0xe   :  { %486 = shalt.err (!%p483_p7)
}
   0xf   :  { %s490_s11 = smov 64   ;;  %s491_s12 = smov 4  }
  0x10   :  { %26 = dma.hbm_to_vmem [thread:$0]  %s633_s1, 128, %s21_s25, [#allocation3], %s490_s11, %s490_s11, %s491_s12  }
  0x11   :  { %487 = dma.done.wait [#allocation3], 128  }
  0x12   :  { %488 = vsyncadd [#allocation3], 4294967168  ;;  %v492_v0 = vmov 0.0   ;;  %vm493_vm0 = vmmov 0   ;;  %v439_v1 = vld [vmem:[#allocation2] sm:$0xff]   ;;  %vm97_vm1 = vcmask 130048  }
  0x13   :  { %388 = vmatprep.subr.bf16.mxu0 %v492_v0  ;;  %390 = vmatprep.mubr.msk.bf16.mxu0 %vm493_vm0, %v492_v0  ;;  %v440_v2 = vld [vmem:[%s632_s0] sm:$0xff]   ;;  %v442_v4 = vld [vmem:[%s635_s3 + $0x8] sm:$0xff]   ;;  %v443_v5 = vld [vmem:[%s635_s3 + $0x10] sm:$0xff]   ;;  %vm338_vm2 = vcmask 64512  }
  0x14   :  { %394 = vmatprep.subr.bf16.mxu1 %v492_v0  ;;  %410 = vmatprep.mubr.msk.bf16.mxu1 %vm493_vm0, %v492_v0  ;;  %v441_v3 = vld [vmem:[%s635_s3] sm:$0xff]   ;;  %v444_v6 = vld [vmem:[%s635_s3 + $0x18] sm:$0xff]   ;;  %v446_v8 = vld [vmem:[%s635_s3 + $0x28] sm:$0xff]  }
  0x15   :  { %389 = vmatpush3.bf16.msra.mxu0 %v439_v1  ;;  %395 = vmatpush3.bf16.msra.mxu1 %v441_v3  ;;  %v445_v7 = vld [vmem:[%s635_s3 + $0x20] sm:$0xff]   ;;  %v447_v9 = vld [vmem:[%s635_s3 + $0x30] sm:$0xff]   ;;  %v448_v10 = vld [vmem:[%s635_s3 + $0x38] sm:$0xff]  }
  0x16   :  { %414 = vmatprep.subr.bf16.mxu0 %v492_v0  ;;  %396 = vmatprep.subr.bf16.mxu1 %v492_v0  ;;  %v449_v11 = vld [vmem:[%s637_s5] sm:$0xff]   ;;  %v450_v12 = vld [vmem:[%s637_s5 + $0x8] sm:$0xff]   ;;  %v451_v13 = vld [vmem:[%s637_s5 + $0x10] sm:$0xff]  }
  0x17   :  { %v452_v14 = vld [vmem:[%s637_s5 + $0x18] sm:$0xff]   ;;  %v346_v15 = vld [vmem:[%s634_s2] ss:$0 sm:$0xff]  ;;  %v454_v26 = vld [vmem:[%s637_s5 + $0x28] sm:$0xff]  }
  0x18   :  { %391 = vmatmul.mubr.msk.bf16.vlgmr.msra.gmra.mrb[0].mxu0 %vm97_vm1, %v440_v2  ;;  %v453_v25 = vld [vmem:[%s637_s5 + $0x20] sm:$0xff]   ;;  %v455_v27 = vld [vmem:[%s637_s5 + $0x30] sm:$0xff]   ;;  %v456_v28 = vld [vmem:[%s637_s5 + $0x38] sm:$0xff]  }
  0x19   :  { %430 = vmatprep.mubr.msk.bf16.mxu0 %vm493_vm0, %v492_v0  ;;  %397 = vmatpush3.bf16.msra.mxu1 %v442_v4  ;;  %v350_v29 = vld [vmem:[%s636_s4] ss:$0 sm:$0xff] }
  0x1a   :  { %398 = vmatprep.subr.bf16.mxu1 %v492_v0  ;;  %415 = vmatpush3.bf16.msra.mxu0 %v449_v11  ;;  %v359_v39 = vld [vmem:[%s638_s6] ss:$0 sm:$0xff] }
  0x1b   :  { %416 = vmatprep.subr.bf16.mxu0 %v492_v0 }
  0x1d   :  { %399 = vmatpush3.bf16.msra.mxu1 %v443_v5 }
  0x1e   :  { %400 = vmatprep.subr.bf16.mxu1 %v492_v0  ;;  %417 = vmatpush3.bf16.msra.mxu0 %v450_v12 }
  0x1f   :  { %418 = vmatprep.subr.bf16.mxu0 %v492_v0 }
  0x21   :  { %401 = vmatpush3.bf16.msra.mxu1 %v444_v6 }
  0x22   :  { %402 = vmatprep.subr.bf16.mxu1 %v492_v0  ;;  %419 = vmatpush3.bf16.msra.mxu0 %v451_v13 }
  0x23   :  { %420 = vmatprep.subr.bf16.mxu0 %v492_v0 }
  0x25   :  { %403 = vmatpush3.bf16.msra.mxu1 %v445_v7 }
  0x26   :  { %404 = vmatprep.subr.bf16.mxu1 %v492_v0  ;;  %421 = vmatpush3.bf16.msra.mxu0 %v452_v14 }
  0x27   :  { %422 = vmatprep.subr.bf16.mxu0 %v492_v0 }
  0x29   :  { %405 = vmatpush3.bf16.msra.mxu1 %v446_v8 }
  0x2a   :  { %406 = vmatprep.subr.bf16.mxu1 %v492_v0  ;;  %423 = vmatpush3.bf16.msra.mxu0 %v453_v25 }
  0x2b   :  { %424 = vmatprep.subr.bf16.mxu0 %v492_v0 }
  0x2d   :  { %407 = vmatpush3.bf16.msra.mxu1 %v447_v9 }
  0x2e   :  { %408 = vmatprep.subr.bf16.mxu1 %v492_v0  ;;  %425 = vmatpush3.bf16.msra.mxu0 %v454_v26 }
  0x2f   :  { %426 = vmatprep.subr.bf16.mxu0 %v492_v0 }
  0x31   :  { %409 = vmatpush3.bf16.msra.mxu1 %v448_v10 }
  0x32   :  { %427 = vmatpush3.bf16.msra.mxu0 %v455_v27 }
  0x33   :  { %428 = vmatprep.subr.bf16.mxu0 %v492_v0 }
  0x36   :  { %429 = vmatpush3.bf16.msra.mxu0 %v456_v28 }
  0xeb   :  { %v135_v16 = vpop.f32.mrb[0].mxu0 }
  0xec   :  { %v136_v17 = vadd.f32 %v346_v15, %v135_v16  ;;  %v392_v18 = vpop.f32.mrb[1].mxu0 }
  0xed   :  { %v138_v19 = vpop.f32.mrb[2].mxu0 }
  0xee   :  { %v139_v20 = vadd.f32 %v346_v15, %v138_v19  ;;  %v393_v21 = vpop.f32.mrb[3].mxu0  ;;  %457 = vtanh.f32 %v136_v17 }
  0xf0   :  { %459 = vtanh.f32 %v139_v20 }
  0xf8   :  { %v458_v22 = vpop.eup %457 }
  0xfa   :  { %v460_v23 = vpop.eup %459 }
  0xfb   :  { %v144_v24 = vpack.c.bf16 %v460_v23, %v458_v22 }
  0xfd   :  { %411 = vmatmul.mubr.bf16.vlgmr.msra.gmra.mrb[0].mxu1 %v144_v24 }
 0x1d0   :  { %v233_v30 = vpop.f32.mrb[0].mxu1 }
 0x1d1   :  { %v234_v31 = vadd.f32 %v350_v29, %v233_v30  ;;  %v412_v32 = vpop.f32.mrb[1].mxu1 }
 0x1d2   :  { %v236_v33 = vpop.f32.mrb[2].mxu1 }
 0x1d3   :  { %v237_v34 = vadd.f32 %v350_v29, %v236_v33  ;;  %v413_v35 = vpop.f32.mrb[3].mxu1  ;;  %461 = vtanh.f32 %v234_v31 }
 0x1d5   :  { %463 = vtanh.f32 %v237_v34 }
 0x1dd   :  { %v462_v36 = vpop.eup %461 }
 0x1df   :  { %v464_v37 = vpop.eup %463 }
 0x1e0   :  { %v242_v38 = vpack.c.bf16 %v464_v37, %v462_v36 }
 0x1e2   :  { %431 = vmatmul.mubr.bf16.vlgmr.msra.gmra.mrb[4].mxu0 %v242_v38 }
 0x2b5   :  { %v331_v40 = vpop.f32.mrb[4].mxu0 }
 0x2b6   :  { %v332_v41 = vadd.f32 %v359_v39, %v331_v40  ;;  %v432_v42 = vpop.f32.mrb[5].mxu0 }
 0x2b7   :  { %v334_v43 = vpop.f32.mrb[6].mxu0 }
 0x2b8   :  { %339 = vst.msk [vmem:[%s639_s7] sm:$0xff] %vm338_vm2, %v332_v41  ;;  %v335_v44 = vadd.f32 %v359_v39, %v334_v43  ;;  %v433_v45 = vpop.f32.mrb[7].mxu0 }
 0x2ba   :  { %340 = vst.msk [vmem:[%s639_s7 + $0x8] sm:$0xff] %vm338_vm2, %v335_v44 }
 0x2bb   :  { %345 = vsyncpa [#allocation3], 1 }

</bundles_post_ra>
